<compile_context>
chip_gen: v6e
topology: v6e:2x2x1
jax: 0.10.0
libtpu: 0.0.40
codegen_flags: <defaults>
</compile_context>

<pallas_src>
import jax
import jax.numpy as jnp
from jax.experimental import pallas as pl
from jax.experimental.pallas import tpu as pltpu


def _choose_spatial_tile(HW, N, cin, cout4, *, vmem_budget=16 * 1024 * 1024):
    """Pick the per-step spatial tile (columns of H*W on the lane axis)."""
    # Bytes per spatial column resident in VMEM (double-buffered f32 in + bf16 out).
    bytes_per_col = 2 * (cin * 4 + cout4 * 2)
    max_cols = max(128, vmem_budget // bytes_per_col)
    if HW % 128 != 0 and HW <= max_cols:
        # Ragged spatial extent that fits in one block: use the full dim
        # (allowed by the (8,128) rule when block dim == array dim).
        return HW
    tl = min(HW, max_cols)
    tl = max(128, (tl // 128) * 128)          # lane-dense tiles
    if N == 1 and tl >= HW and HW % 256 == 0:
        tl = HW // 2                          # guarantee >=2 grid steps (v7x: 2 TCs)
    return tl


def _transition_kernel(x_ref, w_ref, b_ref, o_ref):
    # x_ref: (Cin, TL)       per-sample slab of flattened H*W columns (NCHW order)
    # w_ref: (4*Cout, Cin)   fused ConvT2x2 ∘ ConvT1x1 weight, rows = (di, dj, o)
    # b_ref: (4*Cout, 1)     fused bias
    # o_ref: (4*Cout, TL)    bf16 output tile (lane-dense)
    y = jnp.dot(w_ref[...], x_ref[...], preferred_element_type=jnp.float32)
    y = y + b_ref[...]                         # lane-broadcast of the bias column
    y = jnp.where(y >= 0.0, y, 0.01 * y)       # LeakyReLU (slope 0.01), f32 epilogue
    o_ref[...] = y.astype(o_ref.dtype)


def transition_blockT(x, w1, b1, w2, b2):
    """x: (N, Cin, H, W) NCHW.  Returns (N, Cout, 2H, 2W) float32."""
    N, Cin, H, W = x.shape
    Cout = w2.shape[1]
    HW = H * W
    Cout4 = 4 * Cout

    # ---- weight / bias fusion (tiny, once, full precision) -------------------
    w2m = w2[:, :, 0, 0]                                          # (Cin, Cout) [c,o]
    # w_all[(di*2+dj)*Cout + o, k] = sum_c w1[k,c,di,dj] * w2m[c,o]
    wc = jnp.einsum('kcde,co->deok', w1, w2m,
                    precision=jax.lax.Precision.HIGHEST)          # (2,2,Cout,Cin)
    w_all = wc.reshape(Cout4, Cin)                                # (4*Cout, Cin)
    bc = jnp.dot(b1, w2m, precision=jax.lax.Precision.HIGHEST) + b2   # (Cout,)
    b_all = jnp.tile(bc, 4).reshape(Cout4, 1)                     # (4*Cout, 1)

    # ---- input: free reshape of NCHW, no permute, no padding -----------------
    x3 = x.reshape(N, Cin, HW)                                    # (N, Cin, HW)

    tl = _choose_spatial_tile(HW, N, Cin, Cout4)
    grid = (N, pl.cdiv(HW, tl))

    flops = 2 * N * HW * Cin * Cout4
    bytes_accessed = (4 * N * HW * Cin            # x read (f32)
                      + 4 * Cin * Cout4 + 4 * Cout4
                      + 2 * N * HW * Cout4)       # bf16 output write

    y = pl.pallas_call(
        _transition_kernel,
        out_shape=jax.ShapeDtypeStruct((N, Cout4, HW), jnp.bfloat16),
        grid=grid,
        in_specs=[
            pl.BlockSpec((None, Cin, tl), lambda n, s: (n, 0, s)),   # x slab
            pl.BlockSpec((Cout4, Cin), lambda n, s: (0, 0)),         # VMEM-resident
            pl.BlockSpec((Cout4, 1), lambda n, s: (0, 0)),           # VMEM-resident
        ],
        out_specs=pl.BlockSpec((None, Cout4, tl), lambda n, s: (n, 0, s)),
        compiler_params=pltpu.CompilerParams(
            dimension_semantics=("parallel", "parallel"),
            vmem_limit_bytes=32 * 1024 * 1024,
        ),
        cost_estimate=pl.CostEstimate(
            flops=flops, transcendentals=0, bytes_accessed=bytes_accessed),
    )(x3, w_all, b_all)

    # ---- sub-pixel scatter into the 2x-upsampled NCHW grid (one XLA permute) --
    y = y.reshape(N, 2, 2, Cout, H, W)          # [n, di, dj, o, i, j]
    y = jnp.transpose(y, (0, 3, 4, 1, 5, 2))    # [n, o, i, di, j, dj]
    return y.reshape(N, Cout, 2 * H, 2 * W).astype(jnp.float32)


def _reference(x, w1, b1, w2, b2):
    """Plain-JAX full-precision reference of the PyTorch forward."""
    N, Cin, H, W = x.shape
    Cout = w2.shape[1]
    # ConvTranspose2d(Cin, Cin, 2, 2, 0)
    up = jnp.einsum('nkij,kcde->ncidje', x, w1,
                    precision=jax.lax.Precision.HIGHEST)
    up = up.reshape(N, Cin, 2 * H, 2 * W) + b1[None, :, None, None]
    # ConvTranspose2d(Cin, Cout, 1, 1, 0)
    y = jnp.einsum('nchw,co->nohw', up, w2[:, :, 0, 0],
                   precision=jax.lax.Precision.HIGHEST)
    y = y + b2[None, :, None, None]
    return jnp.where(y >= 0.0, y, 0.01 * y)


if __name__ == "__main__":
    # Module defaults: in_ch=16, out_ch=48, IN=False.  Small spatial size.
    N, Cin, Cout, H, W = 2, 16, 48, 8, 8

    key = jax.random.PRNGKey(0)
    kx, k1, k2, k3, k4 = jax.random.split(key, 5)

    x = jax.random.normal(kx, (N, Cin, H, W), dtype=jnp.float32)
    # ConvTranspose2d weight layout: (in_ch, out_ch, kH, kW)
    w1 = jax.random.normal(k1, (Cin, Cin, 2, 2), dtype=jnp.float32) * 0.1
    b1 = jax.random.normal(k2, (Cin,), dtype=jnp.float32) * 0.1
    w2 = jax.random.normal(k3, (Cin, Cout, 1, 1), dtype=jnp.float32) * 0.1
    b2 = jax.random.normal(k4, (Cout,), dtype=jnp.float32) * 0.1

    out = jax.jit(transition_blockT)(x, w1, b1, w2, b2)
    out = jax.block_until_ready(out)

    ref = _reference(x, w1, b1, w2, b2)
    assert out.shape == (N, Cout, 2 * H, 2 * W), out.shape
    # Kernel matmul runs at default MXU precision with fused weights and the
    # kernel output is bf16 (bandwidth-bound kernel) -> bf16-level accuracy
    # contract vs the full-precision two-step reference.
    assert jnp.allclose(out, ref, atol=2e-2, rtol=2e-2), \
        float(jnp.max(jnp.abs(out - ref)))

    print("KERNEL_OK")
</pallas_src>

<mosaic_0001>
module attributes {stable_mosaic.version = 11 : i64} {
  func.func @_transition_kernel(%arg0: i32, %arg1: i32, %arg2: memref<1x16x64xf32, #tpu.memory_space<vmem>>, %arg3: memref<192x16xf32, #tpu.memory_space<vmem>>, %arg4: memref<192x1xf32, #tpu.memory_space<vmem>>, %arg5: memref<1x192x64xbf16, #tpu.memory_space<vmem>>) attributes {dimension_semantics = [#tpu.dimension_semantics<parallel>, #tpu.dimension_semantics<parallel>], iteration_bounds = array<i64: 2, 1>, scalar_prefetch = 0 : i64, scratch_operands = 0 : i64, tpu.core_type = #tpu.core_type<tc>, window_params = [{transform_indices = @transform_0, window_bounds = array<i64: 1, 16, 64>}, {pipeline_mode = #tpu.pipeline_mode<synchronous>, transform_indices = @transform_1, window_bounds = array<i64: 192, 16>}, {pipeline_mode = #tpu.pipeline_mode<synchronous>, transform_indices = @transform_2, window_bounds = array<i64: 192, 1>}, {transform_indices = @transform_3, window_bounds = array<i64: 1, 192, 64>}]} {
    %c0 = arith.constant 0 : index
    %c0_0 = arith.constant 0 : index
    %0 = vector.load %arg3[%c0, %c0_0] : memref<192x16xf32, #tpu.memory_space<vmem>>, vector<192x16xf32>
    %c0_1 = arith.constant 0 : index
    %c0_2 = arith.constant 0 : index
    %c0_3 = arith.constant 0 : index
    %1 = vector.load %arg2[%c0_1, %c0_2, %c0_3] : memref<1x16x64xf32, #tpu.memory_space<vmem>>, vector<1x16x64xf32>
    %2 = vector.shape_cast %1 : vector<1x16x64xf32> to vector<16x64xf32>
    %cst = arith.constant dense<0.000000e+00> : vector<192x64xf32>
    %3 = tpu.matmul %0, %2, %cst {dimension_numbers = #tpu.dot_dimension_numbers<[1], [0], [0], [1], [0, 0, 1, 1], [], []>} : vector<192x16xf32>, vector<16x64xf32>, vector<192x64xf32> -> vector<192x64xf32>
    %c0_4 = arith.constant 0 : index
    %c0_5 = arith.constant 0 : index
    %4 = vector.load %arg4[%c0_4, %c0_5] : memref<192x1xf32, #tpu.memory_space<vmem>>, vector<192x1xf32>
    %5 = vector.broadcast %4 : vector<192x1xf32> to vector<192x64xf32>
    %6 = arith.addf %3, %5 : vector<192x64xf32>
    %cst_6 = arith.constant 0.000000e+00 : f32
    %7 = vector.broadcast %cst_6 : f32 to vector<192x64xf32>
    %8 = arith.cmpf oge, %6, %7 : vector<192x64xf32>
    %cst_7 = arith.constant 0.00999999977 : f32
    %9 = vector.broadcast %cst_7 : f32 to vector<192x64xf32>
    %10 = arith.mulf %9, %6 : vector<192x64xf32>
    %11 = arith.select %8, %6, %10 : vector<192x64xi1>, vector<192x64xf32>
    %12 = arith.truncf %11 : vector<192x64xf32> to vector<192x64xbf16>
    %c0_8 = arith.constant 0 : index
    %c0_9 = arith.constant 0 : index
    %c0_10 = arith.constant 0 : index
    %13 = vector.load %arg5[%c0_8, %c0_9, %c0_10] : memref<1x192x64xbf16, #tpu.memory_space<vmem>>, vector<1x192x64xbf16>
    %14 = vector.shape_cast %13 : vector<1x192x64xbf16> to vector<192x64xbf16>
    %15 = vector.shape_cast %12 : vector<192x64xbf16> to vector<1x192x64xbf16>
    tpu.vector_store %arg5[%c0_8, %c0_9, %c0_10], %15 {strides = array<i32>} : memref<1x192x64xbf16, #tpu.memory_space<vmem>>, vector<1x192x64xbf16>,
    return
  }
  func.func @transform_0(%arg0: i32, %arg1: i32) -> (i32, i32, i32) {
    %c0_i32 = arith.constant 0 : i32
    %c0_i32_0 = arith.constant 0 : i32
    return %arg0, %c0_i32, %arg1 : i32, i32, i32
  }
  func.func @transform_1(%arg0: i32, %arg1: i32) -> (i32, i32) {
    %c0_i32 = arith.constant 0 : i32
    %c0_i32_0 = arith.constant 0 : i32
    %c0_i32_1 = arith.constant 0 : i32
    return %c0_i32, %c0_i32_0 : i32, i32
  }
  func.func @transform_2(%arg0: i32, %arg1: i32) -> (i32, i32) {
    %c0_i32 = arith.constant 0 : i32
    %c0_i32_0 = arith.constant 0 : i32
    %c0_i32_1 = arith.constant 0 : i32
    return %c0_i32, %c0_i32_0 : i32, i32
  }
  func.func @transform_3(%arg0: i32, %arg1: i32) -> (i32, i32, i32) {
    %c0_i32 = arith.constant 0 : i32
    %c0_i32_0 = arith.constant 0 : i32
    return %arg0, %c0_i32, %arg1 : i32, i32, i32
  }
}

</mosaic_0001>

<bundles_post_ra>
// kernel: tile.8
= control target key start
LH: loop header
LB: loop body
LE: loop exit
PB: predicated region body
PF: predicated region fallthrough
CT: control target
= control target key end

     0   :  { %s22_s0 = inlined_call_operand.vmem [shape: f32[48], index: 0, kind: input, shape index: {}]   ;;  %s23_s1 = inlined_call_operand.vmem [shape: f32[4,48], index: 1, kind: output, shape index: {}]  }
   0x1   :  { %v4_v0 = vld [vmem:[%s22_s0] ss:$0 sm:$0xff] }
   0x2   :  { %5 = vst [vmem:[%s23_s1] sm:$0xf] %v4_v0 }

// kernel: tile.0
= control target key start
LH: loop header
LB: loop body
LE: loop exit
PB: predicated region body
PF: predicated region fallthrough
CT: control target
= control target key end

     0   :  { %s529_s8 = smov 125   ;;  %s530_s9 = smov 126   ;;  %vm8_vm0 = vcmask 7168   ;;  %s972_s0 = inlined_call_operand.vmem [shape: f32[4,48], index: 0, kind: input, shape index: {}]   ;;  %s973_s1 = inlined_call_operand.vmem [shape: f32[192,1], index: 1, kind: output, shape index: {}]  }
   0x1   :  { %v5_v0 = vld [vmem:[%s972_s0] sm:$0xf]  ;;  %s528_s0 = smov 127   ;;  %s531_s10 = smov 124  }
   0x2   :  { %6 = vst [vmem:[#allocation0] sm:$0xf] %v5_v0  ;;  %s532_s11 = smov 123   ;;  %s533_s12 = smov 122  }
   0x3   :  { %s534_s13 = smov 121   ;;  %s535_s14 = smov 120  }
   0x4   :  { %s536_s15 = smov 119   ;;  %s537_s16 = smov 118  }
   0x5   :  { %s538_s17 = smov 117   ;;  %s539_s18 = smov 116  }
   0x6   :  { %s540_s19 = smov 115   ;;  %s541_s20 = smov 114  }
   0x7   :  { %s542_s21 = smov 113   ;;  %s543_s22 = smov 112  }
   0x8   :  { %s544_s23 = smov 111   ;;  %s545_s24 = smov 110  }
   0x9   :  { %v11_v1 = vld [vmem:[#allocation0] sm:$0xf]   ;;  %s546_s25 = smov 109   ;;  %s547_s26 = smov 108  }
   0xa   :  { %v27_v2 = vld [vmem:[#allocation0] sm:$0xf]   ;;  %12 = vrot.lane.b32.xlu0 %v11_v1, %s528_s0  ;;  %s548_s27 = smov 107   ;;  %s549_s28 = smov 106  }
   0xb   :  { %28 = vrot.lane.b32.xlu1 %v27_v2, %s529_s8  ;;  %v19_v3 = vld [vmem:[#allocation0] sm:$0xf]   ;;  %s550_s29 = smov 105   ;;  %s551_s30 = smov 104  }
   0xc   :  { %v35_v4 = vld [vmem:[#allocation0] sm:$0xf]   ;;  %s552_s2 = smov 103   ;;  %s553_s3 = smov 102  }
   0xd   :  { %v43_v5 = vld [vmem:[#allocation0] sm:$0xf]   ;;  %s554_s4 = smov 101   ;;  %s555_s5 = smov 100  }
   0xe   :  { %20 = vrot.lane.b32.xlu0 %v19_v3, %s530_s9  ;;  %v51_v6 = vld [vmem:[#allocation0] sm:$0xf]   ;;  %s556_s6 = smov 99   ;;  %s557_s7 = smov 98  }
   0xf   :  { %36 = vrot.lane.b32.xlu1 %v35_v4, %s531_s10  ;;  %v59_v7 = vld [vmem:[#allocation0] sm:$0xf]   ;;  %s558_s0 = smov 97   ;;  %s559_s8 = smov 96  }
  0x10   :  { %v67_v8 = vld [vmem:[#allocation0] sm:$0xf]   ;;  %s560_s9 = smov 95   ;;  %s561_s10 = smov 94  }
  0x11   :  { %v75_v9 = vld [vmem:[#allocation0] sm:$0xf]  }
  0x12   :  { %44 = vrot.lane.b32.xlu0 %v43_v5, %s532_s11  ;;  %v83_v10 = vld [vmem:[#allocation0] sm:$0xf]   ;;  %s562_s11 = smov 93  }
  0x13   :  { %52 = vrot.lane.b32.xlu1 %v51_v6, %s533_s12  ;;  %v91_v11 = vld [vmem:[#allocation0] sm:$0xf]   ;;  %s563_s12 = smov 92  }
  0x14   :  { %v99_v12 = vld [vmem:[#allocation0] sm:$0xf]  }
  0x15   :  { %v107_v13 = vld [vmem:[#allocation0] sm:$0xf]  }
  0x16   :  { %60 = vrot.lane.b32.xlu0 %v59_v7, %s534_s13  ;;  %v115_v14 = vld [vmem:[#allocation0] sm:$0xf]   ;;  %s564_s13 = smov 91  }
  0x17   :  { %68 = vrot.lane.b32.xlu1 %v67_v8, %s535_s14  ;;  %v123_v15 = vld [vmem:[#allocation0] sm:$0xf]   ;;  %s565_s14 = smov 90  }
  0x18   :  { %v131_v16 = vld.sshfl [vmem:[#allocation0] sm:$0xff pattern:$0x22222301]  }
  0x19   :  { %v259_v17 = vld [vmem:[#allocation0] sm:$0xf]  }
  0x1a   :  { %76 = vrot.lane.b32.xlu0 %v75_v9, %s536_s15  ;;  %v267_v18 = vld [vmem:[#allocation0] sm:$0xf]   ;;  %s566_s15 = smov 89  }
  0x1b   :  { %84 = vrot.lane.b32.xlu1 %v83_v10, %s537_s16  ;;  %v275_v19 = vld [vmem:[#allocation0] sm:$0xf]   ;;  %s567_s16 = smov 88  }
  0x1c   :  { %v283_v20 = vld [vmem:[#allocation0] sm:$0xf]  }
  0x1d   :  { %v291_v21 = vld [vmem:[#allocation0] sm:$0xf]  }
  0x1e   :  { %92 = vrot.lane.b32.xlu0 %v91_v11, %s538_s17  ;;  %v299_v22 = vld [vmem:[#allocation0] sm:$0xf]  }
  0x1f   :  { %100 = vrot.lane.b32.xlu1 %v99_v12, %s539_s18  ;;  %v307_v23 = vld [vmem:[#allocation0] sm:$0xf]  }
  0x20   :  { %v315_v24 = vld [vmem:[#allocation0] sm:$0xf]  }
  0x21   :  { %v323_v25 = vld [vmem:[#allocation0] sm:$0xf]  }
  0x22   :  { %108 = vrot.lane.b32.xlu0 %v107_v13, %s540_s19  ;;  %v331_v26 = vld [vmem:[#allocation0] sm:$0xf]  }
  0x23   :  { %116 = vrot.lane.b32.xlu1 %v115_v14, %s541_s20  ;;  %v339_v27 = vld [vmem:[#allocation0] sm:$0xf]  }
  0x24   :  { %v7_v28 = vld [vmem:[#allocation0] sm:$0xf]  }
  0x25   :  { %9 = vst.msk [vmem:[%s973_s1] ss:$48 sm:$0x3] %vm8_vm0, %v7_v28   ;;  %10 = vst.msk [vmem:[%s973_s1] ss:$48 sm:$0xc] %vm8_vm0, %v7_v28  }
  0x26   :  { %124 = vrot.lane.b32.xlu0 %v123_v15, %s542_s21  ;;  %s568_s21 = smov 87   ;;  %v347_v29 = vld [vmem:[#allocation0] sm:$0xf]  }
  0x27   :  { %132 = vrot.lane.b32.xlu1 %v131_v16, %s543_s22  ;;  %s569_s22 = smov 86   ;;  %v355_v30 = vld [vmem:[#allocation0] sm:$0xf]  }
  0x28   :  { %v363_v31 = vld [vmem:[#allocation0] sm:$0xf]  }
  0x29   :  { %v371_v32 = vld [vmem:[#allocation0] sm:$0xf]  }
  0x2a   :  { %140 = vrot.lane.b32.xlu0 %v131_v16, %s544_s23  ;;  %s570_s23 = smov 85   ;;  %v379_v33 = vld [vmem:[#allocation0] sm:$0xf]  }
  0x2b   :  { %148 = vrot.lane.b32.xlu1 %v131_v16, %s545_s24  ;;  %s571_s24 = smov 84  }
  0x2e   :  { %156 = vrot.lane.b32.xlu0 %v131_v16, %s546_s25  ;;  %s572_s25 = smov 83  }
  0x2f   :  { %164 = vrot.lane.b32.xlu1 %v131_v16, %s547_s26  ;;  %s573_s26 = smov 82  }
  0x32   :  { %172 = vrot.lane.b32.xlu0 %v131_v16, %s548_s27  ;;  %s574_s27 = smov 81  }
  0x33   :  { %180 = vrot.lane.b32.xlu1 %v131_v16, %s549_s28 }
  0x36   :  { %188 = vrot.lane.b32.xlu0 %v131_v16, %s550_s29 }
  0x37   :  { %196 = vrot.lane.b32.xlu1 %v131_v16, %s551_s30 }
  0x3a   :  { %204 = vrot.lane.b32.xlu0 %v131_v16, %s552_s2 }
  0x3b   :  { %212 = vrot.lane.b32.xlu1 %v131_v16, %s553_s3 }
  0x3e   :  { %220 = vrot.lane.b32.xlu0 %v131_v16, %s554_s4 }
  0x3f   :  { %228 = vrot.lane.b32.xlu1 %v131_v16, %s555_s5 }
  0x42   :  { %236 = vrot.lane.b32.xlu0 %v131_v16, %s556_s6 }
  0x43   :  { %244 = vrot.lane.b32.xlu1 %v131_v16, %s557_s7 }
  0x46   :  { %252 = vrot.lane.b32.xlu0 %v131_v16, %s558_s0 }
  0x47   :  { %260 = vrot.lane.b32.xlu1 %v259_v17, %s559_s8 }
  0x4a   :  { %268 = vrot.lane.b32.xlu0 %v267_v18, %s560_s9 }
  0x4b   :  { %276 = vrot.lane.b32.xlu1 %v275_v19, %s561_s10 }
  0x4e   :  { %284 = vrot.lane.b32.xlu0 %v283_v20, %s562_s11 }
  0x4f   :  { %292 = vrot.lane.b32.xlu1 %v291_v21, %s563_s12 }
  0x52   :  { %300 = vrot.lane.b32.xlu0 %v299_v22, %s564_s13 }
  0x53   :  { %308 = vrot.lane.b32.xlu1 %v307_v23, %s565_s14 }
  0x56   :  { %316 = vrot.lane.b32.xlu0 %v315_v24, %s566_s15 }
  0x57   :  { %324 = vrot.lane.b32.xlu1 %v323_v25, %s567_s16 }
  0x5a   :  { %332 = vrot.lane.b32.xlu0 %v331_v26, %s568_s21 }
  0x5b   :  { %340 = vrot.lane.b32.xlu1 %v339_v27, %s569_s22 }
  0x5e   :  { %348 = vrot.lane.b32.xlu0 %v347_v29, %s570_s23 }
  0x5f   :  { %356 = vrot.lane.b32.xlu1 %v355_v30, %s571_s24 }
  0x62   :  { %364 = vrot.lane.b32.xlu0 %v363_v31, %s572_s25 }
  0x63   :  { %372 = vrot.lane.b32.xlu1 %v371_v32, %s573_s26 }
  0x66   :  { %380 = vrot.lane.b32.xlu0 %v379_v33, %s574_s27 }
  0x7c   :  { %v13_v34 = vpop.permute.xlu0 %12  }
  0x7d   :  { %v29_v35 = vpop.permute.xlu1 %28   ;;  %387 = vst.msk [vmem:[%s973_s1 + $0x1] ss:$48 sm:$0x3] %vm8_vm0, %v13_v34   ;;  %388 = vst.msk [vmem:[%s973_s1 + $0x1] ss:$48 sm:$0xc] %vm8_vm0, %v13_v34  }
  0x7e   :  { %391 = vst.msk [vmem:[%s973_s1 + $0x3] ss:$48 sm:$0x3] %vm8_vm0, %v29_v35   ;;  %392 = vst.msk [vmem:[%s973_s1 + $0x3] ss:$48 sm:$0xc] %vm8_vm0, %v29_v35  }
  0x80   :  { %v21_v36 = vpop.permute.xlu0 %20  }
  0x81   :  { %v37_v37 = vpop.permute.xlu1 %36   ;;  %389 = vst.msk [vmem:[%s973_s1 + $0x2] ss:$48 sm:$0x3] %vm8_vm0, %v21_v36   ;;  %390 = vst.msk [vmem:[%s973_s1 + $0x2] ss:$48 sm:$0xc] %vm8_vm0, %v21_v36  }
  0x82   :  { %393 = vst.msk [vmem:[%s973_s1 + $0x4] ss:$48 sm:$0x3] %vm8_vm0, %v37_v37   ;;  %394 = vst.msk [vmem:[%s973_s1 + $0x4] ss:$48 sm:$0xc] %vm8_vm0, %v37_v37  }
  0x84   :  { %v45_v38 = vpop.permute.xlu0 %44  }
  0x85   :  { %v53_v39 = vpop.permute.xlu1 %52   ;;  %395 = vst.msk [vmem:[%s973_s1 + $0x5] ss:$48 sm:$0x3] %vm8_vm0, %v45_v38   ;;  %396 = vst.msk [vmem:[%s973_s1 + $0x5] ss:$48 sm:$0xc] %vm8_vm0, %v45_v38  }
  0x86   :  { %397 = vst.msk [vmem:[%s973_s1 + $0x6] ss:$48 sm:$0x3] %vm8_vm0, %v53_v39   ;;  %398 = vst.msk [vmem:[%s973_s1 + $0x6] ss:$48 sm:$0xc] %vm8_vm0, %v53_v39  }
  0x88   :  { %v61_v40 = vpop.permute.xlu0 %60  }
  0x89   :  { %v69_v41 = vpop.permute.xlu1 %68   ;;  %399 = vst.msk [vmem:[%s973_s1 + $0x7] ss:$48 sm:$0x3] %vm8_vm0, %v61_v40   ;;  %400 = vst.msk [vmem:[%s973_s1 + $0x7] ss:$48 sm:$0xc] %vm8_vm0, %v61_v40  }
  0x8a   :  { %401 = vst.msk [vmem:[%s973_s1 + $0x8] ss:$48 sm:$0x3] %vm8_vm0, %v69_v41   ;;  %402 = vst.msk [vmem:[%s973_s1 + $0x8] ss:$48 sm:$0xc] %vm8_vm0, %v69_v41  }
  0x8c   :  { %v77_v42 = vpop.permute.xlu0 %76  }
  0x8d   :  { %v85_v43 = vpop.permute.xlu1 %84   ;;  %403 = vst.msk [vmem:[%s973_s1 + $0x9] ss:$48 sm:$0x3] %vm8_vm0, %v77_v42   ;;  %404 = vst.msk [vmem:[%s973_s1 + $0x9] ss:$48 sm:$0xc] %vm8_vm0, %v77_v42  }
  0x8e   :  { %405 = vst.msk [vmem:[%s973_s1 + $0xa] ss:$48 sm:$0x3] %vm8_vm0, %v85_v43   ;;  %406 = vst.msk [vmem:[%s973_s1 + $0xa] ss:$48 sm:$0xc] %vm8_vm0, %v85_v43  }
  0x90   :  { %v93_v44 = vpop.permute.xlu0 %92  }
  0x91   :  { %v101_v45 = vpop.permute.xlu1 %100   ;;  %407 = vst.msk [vmem:[%s973_s1 + $0xb] ss:$48 sm:$0x3] %vm8_vm0, %v93_v44   ;;  %408 = vst.msk [vmem:[%s973_s1 + $0xb] ss:$48 sm:$0xc] %vm8_vm0, %v93_v44  }
  0x92   :  { %409 = vst.msk [vmem:[%s973_s1 + $0xc] ss:$48 sm:$0x3] %vm8_vm0, %v101_v45   ;;  %410 = vst.msk [vmem:[%s973_s1 + $0xc] ss:$48 sm:$0xc] %vm8_vm0, %v101_v45  }
  0x94   :  { %v109_v46 = vpop.permute.xlu0 %108  }
  0x95   :  { %v117_v47 = vpop.permute.xlu1 %116   ;;  %411 = vst.msk [vmem:[%s973_s1 + $0xd] ss:$48 sm:$0x3] %vm8_vm0, %v109_v46   ;;  %412 = vst.msk [vmem:[%s973_s1 + $0xd] ss:$48 sm:$0xc] %vm8_vm0, %v109_v46  }
  0x96   :  { %413 = vst.msk [vmem:[%s973_s1 + $0xe] ss:$48 sm:$0x3] %vm8_vm0, %v117_v47   ;;  %414 = vst.msk [vmem:[%s973_s1 + $0xe] ss:$48 sm:$0xc] %vm8_vm0, %v117_v47  }
  0x98   :  { %v125_v48 = vpop.permute.xlu0 %124  }
  0x99   :  { %v133_v49 = vpop.permute.xlu1 %132   ;;  %415 = vst.msk [vmem:[%s973_s1 + $0xf] ss:$48 sm:$0x3] %vm8_vm0, %v125_v48   ;;  %416 = vst.msk [vmem:[%s973_s1 + $0xf] ss:$48 sm:$0xc] %vm8_vm0, %v125_v48  }
  0x9a   :  { %417 = vst.msk [vmem:[%s973_s1 + $0x40] ss:$-48 sm:$0x3] %vm8_vm0, %v133_v49   ;;  %418 = vst.msk [vmem:[%s973_s1 + $0x100] ss:$-48 sm:$0xc] %vm8_vm0, %v133_v49  }
  0x9c   :  { %v141_v50 = vpop.permute.xlu0 %140  }
  0x9d   :  { %v149_v51 = vpop.permute.xlu1 %148   ;;  %419 = vst.msk [vmem:[%s973_s1 + $0x41] ss:$-48 sm:$0x3] %vm8_vm0, %v141_v50   ;;  %420 = vst.msk [vmem:[%s973_s1 + $0x101] ss:$-48 sm:$0xc] %vm8_vm0, %v141_v50  }
  0x9e   :  { %421 = vst.msk [vmem:[%s973_s1 + $0x42] ss:$-48 sm:$0x3] %vm8_vm0, %v149_v51   ;;  %422 = vst.msk [vmem:[%s973_s1 + $0x102] ss:$-48 sm:$0xc] %vm8_vm0, %v149_v51  }
  0xa0   :  { %v157_v52 = vpop.permute.xlu0 %156  }
  0xa1   :  { %v165_v53 = vpop.permute.xlu1 %164   ;;  %423 = vst.msk [vmem:[%s973_s1 + $0x43] ss:$-48 sm:$0x3] %vm8_vm0, %v157_v52   ;;  %424 = vst.msk [vmem:[%s973_s1 + $0x103] ss:$-48 sm:$0xc] %vm8_vm0, %v157_v52  }
  0xa2   :  { %425 = vst.msk [vmem:[%s973_s1 + $0x44] ss:$-48 sm:$0x3] %vm8_vm0, %v165_v53   ;;  %426 = vst.msk [vmem:[%s973_s1 + $0x104] ss:$-48 sm:$0xc] %vm8_vm0, %v165_v53  }
  0xa4   :  { %v173_v54 = vpop.permute.xlu0 %172  }
  0xa5   :  { %v181_v55 = vpop.permute.xlu1 %180   ;;  %427 = vst.msk [vmem:[%s973_s1 + $0x45] ss:$-48 sm:$0x3] %vm8_vm0, %v173_v54   ;;  %428 = vst.msk [vmem:[%s973_s1 + $0x105] ss:$-48 sm:$0xc] %vm8_vm0, %v173_v54  }
  0xa6   :  { %429 = vst.msk [vmem:[%s973_s1 + $0x46] ss:$-48 sm:$0x3] %vm8_vm0, %v181_v55   ;;  %430 = vst.msk [vmem:[%s973_s1 + $0x106] ss:$-48 sm:$0xc] %vm8_vm0, %v181_v55  }
  0xa8   :  { %v189_v56 = vpop.permute.xlu0 %188  }
  0xa9   :  { %v197_v57 = vpop.permute.xlu1 %196   ;;  %431 = vst.msk [vmem:[%s973_s1 + $0x47] ss:$-48 sm:$0x3] %vm8_vm0, %v189_v56   ;;  %432 = vst.msk [vmem:[%s973_s1 + $0x107] ss:$-48 sm:$0xc] %vm8_vm0, %v189_v56  }
  0xaa   :  { %433 = vst.msk [vmem:[%s973_s1 + $0x48] ss:$-48 sm:$0x3] %vm8_vm0, %v197_v57   ;;  %434 = vst.msk [vmem:[%s973_s1 + $0x108] ss:$-48 sm:$0xc] %vm8_vm0, %v197_v57  }
  0xac   :  { %v205_v58 = vpop.permute.xlu0 %204  }
  0xad   :  { %v213_v59 = vpop.permute.xlu1 %212   ;;  %435 = vst.msk [vmem:[%s973_s1 + $0x49] ss:$-48 sm:$0x3] %vm8_vm0, %v205_v58   ;;  %436 = vst.msk [vmem:[%s973_s1 + $0x109] ss:$-48 sm:$0xc] %vm8_vm0, %v205_v58  }
  0xae   :  { %437 = vst.msk [vmem:[%s973_s1 + $0x4a] ss:$-48 sm:$0x3] %vm8_vm0, %v213_v59   ;;  %438 = vst.msk [vmem:[%s973_s1 + $0x10a] ss:$-48 sm:$0xc] %vm8_vm0, %v213_v59  }
  0xb0   :  { %v221_v60 = vpop.permute.xlu0 %220  }
  0xb1   :  { %v229_v61 = vpop.permute.xlu1 %228   ;;  %439 = vst.msk [vmem:[%s973_s1 + $0x4b] ss:$-48 sm:$0x3] %vm8_vm0, %v221_v60   ;;  %440 = vst.msk [vmem:[%s973_s1 + $0x10b] ss:$-48 sm:$0xc] %vm8_vm0, %v221_v60  }
  0xb2   :  { %441 = vst.msk [vmem:[%s973_s1 + $0x4c] ss:$-48 sm:$0x3] %vm8_vm0, %v229_v61   ;;  %442 = vst.msk [vmem:[%s973_s1 + $0x10c] ss:$-48 sm:$0xc] %vm8_vm0, %v229_v61  }
  0xb4   :  { %v237_v62 = vpop.permute.xlu0 %236  }
  0xb5   :  { %v245_v63 = vpop.permute.xlu1 %244   ;;  %443 = vst.msk [vmem:[%s973_s1 + $0x4d] ss:$-48 sm:$0x3] %vm8_vm0, %v237_v62   ;;  %444 = vst.msk [vmem:[%s973_s1 + $0x10d] ss:$-48 sm:$0xc] %vm8_vm0, %v237_v62  }
  0xb6   :  { %445 = vst.msk [vmem:[%s973_s1 + $0x4e] ss:$-48 sm:$0x3] %vm8_vm0, %v245_v63   ;;  %446 = vst.msk [vmem:[%s973_s1 + $0x10e] ss:$-48 sm:$0xc] %vm8_vm0, %v245_v63  }
  0xb8   :  { %v253_v0 = vpop.permute.xlu0 %252  }
  0xb9   :  { %v261_v1 = vpop.permute.xlu1 %260   ;;  %447 = vst.msk [vmem:[%s973_s1 + $0x4f] ss:$-48 sm:$0x3] %vm8_vm0, %v253_v0   ;;  %448 = vst.msk [vmem:[%s973_s1 + $0x10f] ss:$-48 sm:$0xc] %vm8_vm0, %v253_v0  }
  0xba   :  { %449 = vst.msk [vmem:[%s973_s1 + $0x20] ss:$48 sm:$0x3] %vm8_vm0, %v261_v1   ;;  %450 = vst.msk [vmem:[%s973_s1 + $0x20] ss:$48 sm:$0xc] %vm8_vm0, %v261_v1  }
  0xbc   :  { %v269_v2 = vpop.permute.xlu0 %268  }
  0xbd   :  { %v277_v3 = vpop.permute.xlu1 %276   ;;  %451 = vst.msk [vmem:[%s973_s1 + $0x21] ss:$48 sm:$0x3] %vm8_vm0, %v269_v2   ;;  %452 = vst.msk [vmem:[%s973_s1 + $0x21] ss:$48 sm:$0xc] %vm8_vm0, %v269_v2  }
  0xbe   :  { %453 = vst.msk [vmem:[%s973_s1 + $0x22] ss:$48 sm:$0x3] %vm8_vm0, %v277_v3   ;;  %454 = vst.msk [vmem:[%s973_s1 + $0x22] ss:$48 sm:$0xc] %vm8_vm0, %v277_v3  }
  0xc0   :  { %v285_v4 = vpop.permute.xlu0 %284  }
  0xc1   :  { %v293_v5 = vpop.permute.xlu1 %292   ;;  %455 = vst.msk [vmem:[%s973_s1 + $0x23] ss:$48 sm:$0x3] %vm8_vm0, %v285_v4   ;;  %456 = vst.msk [vmem:[%s973_s1 + $0x23] ss:$48 sm:$0xc] %vm8_vm0, %v285_v4  }
  0xc2   :  { %457 = vst.msk [vmem:[%s973_s1 + $0x24] ss:$48 sm:$0x3] %vm8_vm0, %v293_v5   ;;  %458 = vst.msk [vmem:[%s973_s1 + $0x24] ss:$48 sm:$0xc] %vm8_vm0, %v293_v5  }
  0xc4   :  { %v301_v6 = vpop.permute.xlu0 %300  }
  0xc5   :  { %v309_v7 = vpop.permute.xlu1 %308   ;;  %459 = vst.msk [vmem:[%s973_s1 + $0x25] ss:$48 sm:$0x3] %vm8_vm0, %v301_v6   ;;  %460 = vst.msk [vmem:[%s973_s1 + $0x25] ss:$48 sm:$0xc] %vm8_vm0, %v301_v6  }
  0xc6   :  { %461 = vst.msk [vmem:[%s973_s1 + $0x26] ss:$48 sm:$0x3] %vm8_vm0, %v309_v7   ;;  %462 = vst.msk [vmem:[%s973_s1 + $0x26] ss:$48 sm:$0xc] %vm8_vm0, %v309_v7  }
  0xc8   :  { %v317_v8 = vpop.permute.xlu0 %316  }
  0xc9   :  { %v325_v9 = vpop.permute.xlu1 %324   ;;  %463 = vst.msk [vmem:[%s973_s1 + $0x27] ss:$48 sm:$0x3] %vm8_vm0, %v317_v8   ;;  %464 = vst.msk [vmem:[%s973_s1 + $0x27] ss:$48 sm:$0xc] %vm8_vm0, %v317_v8  }
  0xca   :  { %465 = vst.msk [vmem:[%s973_s1 + $0x28] ss:$48 sm:$0x3] %vm8_vm0, %v325_v9   ;;  %466 = vst.msk [vmem:[%s973_s1 + $0x28] ss:$48 sm:$0xc] %vm8_vm0, %v325_v9  }
  0xcc   :  { %v333_v10 = vpop.permute.xlu0 %332  }
  0xcd   :  { %v341_v11 = vpop.permute.xlu1 %340   ;;  %467 = vst.msk [vmem:[%s973_s1 + $0x29] ss:$48 sm:$0x3] %vm8_vm0, %v333_v10   ;;  %468 = vst.msk [vmem:[%s973_s1 + $0x29] ss:$48 sm:$0xc] %vm8_vm0, %v333_v10  }
  0xce   :  { %469 = vst.msk [vmem:[%s973_s1 + $0x2a] ss:$48 sm:$0x3] %vm8_vm0, %v341_v11   ;;  %470 = vst.msk [vmem:[%s973_s1 + $0x2a] ss:$48 sm:$0xc] %vm8_vm0, %v341_v11  }
  0xd0   :  { %v349_v12 = vpop.permute.xlu0 %348  }
  0xd1   :  { %v357_v13 = vpop.permute.xlu1 %356   ;;  %471 = vst.msk [vmem:[%s973_s1 + $0x2b] ss:$48 sm:$0x3] %vm8_vm0, %v349_v12   ;;  %472 = vst.msk [vmem:[%s973_s1 + $0x2b] ss:$48 sm:$0xc] %vm8_vm0, %v349_v12  }
  0xd2   :  { %473 = vst.msk [vmem:[%s973_s1 + $0x2c] ss:$48 sm:$0x3] %vm8_vm0, %v357_v13   ;;  %474 = vst.msk [vmem:[%s973_s1 + $0x2c] ss:$48 sm:$0xc] %vm8_vm0, %v357_v13  }
  0xd4   :  { %v365_v14 = vpop.permute.xlu0 %364  }
  0xd5   :  { %v373_v15 = vpop.permute.xlu1 %372   ;;  %475 = vst.msk [vmem:[%s973_s1 + $0x2d] ss:$48 sm:$0x3] %vm8_vm0, %v365_v14   ;;  %476 = vst.msk [vmem:[%s973_s1 + $0x2d] ss:$48 sm:$0xc] %vm8_vm0, %v365_v14  }
  0xd6   :  { %477 = vst.msk [vmem:[%s973_s1 + $0x2e] ss:$48 sm:$0x3] %vm8_vm0, %v373_v15   ;;  %478 = vst.msk [vmem:[%s973_s1 + $0x2e] ss:$48 sm:$0xc] %vm8_vm0, %v373_v15  }
  0xd8   :  { %v381_v16 = vpop.permute.xlu0 %380  }
  0xd9   :  { %479 = vst.msk [vmem:[%s973_s1 + $0x2f] ss:$48 sm:$0x3] %vm8_vm0, %v381_v16   ;;  %480 = vst.msk [vmem:[%s973_s1 + $0x2f] ss:$48 sm:$0xc] %vm8_vm0, %v381_v16  }

// kernel: transition_blockT.1
= control target key start
LH: loop header
LB: loop body
LE: loop exit
PB: predicated region body
PF: predicated region fallthrough
CT: control target
= control target key end

     0   :  { %s1132_s12 = smov 0   ;;  %s1134_s13 = smov 0   ;;  %s1414_s0 = inlined_call_operand.vmem [shape: f32[2,16,64], index: 0, kind: input, shape index: {}]   ;;  %s1415_s1 = inlined_call_operand.vmem [shape: f32[192,16], index: 1, kind: input, shape index: {}]   ;;  %s1416_s2 = inlined_call_operand.vmem [shape: f32[192,1], index: 2, kind: input, shape index: {}]   ;;  %s1417_s3 = inlined_call_operand.vmem [shape: bf16[2,192,64], index: 3, kind: output, shape index: {}]  }
   0x1   :  { %s1136_s14 = smov 0  }
   0x2 LB: > { %s25_s15 = sadd.s32 1, %s1105_s13  ;;  %p910_p0 = scmp.ge.s32.totalorder %s1109_s14, 1  ;;  %s1109_s14 = sphi %s1136_s14, %s13_s14   ;;  %s1105_s13 = sphi %s1134_s13, %s1419_s13   ;;  %s1101_s12 = sphi %s1132_s12, %s1418_s12  }
   0x3   : > { %p27_p1 = scmp.ge.s32.totalorder %s25_s15, 2  ;;  %p156_p2 = scmp.lt.s32.totalorder %s1109_s14, 3 }
   0x5   : > { %s1421_s15 = smov (%p27_p1, %s25_s15), 0  ;;  %p157_p3 = pnand %p910_p0, %p156_p2 }
   0x6   : > { %p186_p4 = scmp.lt.s32.totalorder (!%p157_p3), %s1101_s12, 1 }
   0x7   : > { %160 = sbr.rel (%p157_p3) target bundleno = 249 (0xf9), region = 32 }
   0xc   : > { %v202_v0 = vld [vmem:[%s1415_s1] sm:$0xff]  ;;  %vm372_vm0 = vcmask 130048   ;;  %v230_v2 = vld [vmem:[%s1416_s2 + $0x10] sm:$0xff]  ;;  %s1423_s12 = smov (!%p186_p4, %s1101_s12), 1  ;;  %v1111_v4 = vmov 0   ;;  %v203_v7 = vld [vmem:[%s1415_s1 + $0x8] sm:$0xff] }
   0xd   : > { %v214_v1 = vld [vmem:[%s1415_s1 + $0x60] sm:$0xff]  ;;  %1019 = vmatprep.mubr.msk.f32.mxu0 %vm372_vm0, %v202_v0  ;;  %1086 = vset.pattern.permute.xlu1 %v1111_v4  ;;  %s964_s24 = sshll.u32 %s1423_s12, 4  ;;  %v215_v8 = vld [vmem:[%s1415_s1 + $0x68] sm:$0xff]  ;;  %v204_v9 = vld [vmem:[%s1415_s1 + $0x10] sm:$0xff]  ;;  %vm798_vm3 = vcmask 519168  }
   0xe   : > { %1037 = vmatprep.mubr.msk.f32.mxu1 %vm372_vm0, %v214_v1  ;;  %v228_v3 = vld [vmem:[%s1416_s2] sm:$0xff]  ;;  %1085 = vset.pattern.permute.xlu0 %v1111_v4  ;;  %s193_s27 = scalar_lea.vmem %s1414_s0, %s964_s24  ;;  %v216_v10 = vld [vmem:[%s1415_s1 + $0x70] sm:$0xff]  ;;  %v231_v11 = vld [vmem:[%s1416_s2 + $0x18] sm:$0xff]  ;;  %s1059_s24 = smul.u32 96, %s1423_s12 }
   0xf   : > { %264 = vperm.xlu1 %1086, %v230_v2   ;;  %254 = vperm.xlu0 %1085, %v228_v3   ;;  %v227_v5 = vld [vmem:[%s193_s27 + $0x8] sm:$0xff]  ;;  %v226_v6 = vld [vmem:[%s193_s27] sm:$0xff]  ;;  %v205_v13 = vld [vmem:[%s1415_s1 + $0x18] sm:$0xff] }
  0x10   : > { %1015 = vmatprep.subr.mxu0 %v227_v5  ;;  %1055 = vmatprep.subr.mxu1 %v227_v5  ;;  %v229_v12 = vld [vmem:[%s1416_s2 + $0x8] sm:$0xff]  ;;  %v217_v14 = vld [vmem:[%s1415_s1 + $0x78] sm:$0xff]  ;;  %v206_v15 = vld [vmem:[%s1415_s1 + $0x20] sm:$0xff]  ;;  %s1344_s27 = scalar_lea.vmem %s1417_s3, %s1059_s24 }
  0x11   : > { %1016 = vmatpush3.msra.mxu0 %v227_v5  ;;  %1057 = vmatpush3.msra.mxu1 %v227_v5  ;;  %v218_v16 = vld [vmem:[%s1415_s1 + $0x80] sm:$0xff]  ;;  %v233_v17 = vld [vmem:[%s1416_s2 + $0x28] sm:$0xff]  ;;  %v208_v21 = vld [vmem:[%s1415_s1 + $0x30] sm:$0xff] }
  0x12   : > { %1017 = vmatprep.subr.mxu0 %v226_v6  ;;  %1056 = vmatprep.subr.mxu1 %v226_v6  ;;  %v232_v18 = vld [vmem:[%s1416_s2 + $0x20] sm:$0xff]  ;;  %v207_v19 = vld [vmem:[%s1415_s1 + $0x28] sm:$0xff]  ;;  %v220_v22 = vld [vmem:[%s1415_s1 + $0x90] sm:$0xff] }
  0x13   : > { %1018 = vmatpush3.msra.mxu0 %v226_v6  ;;  %1058 = vmatpush3.msra.mxu1 %v226_v6  ;;  %v219_v20 = vld [vmem:[%s1415_s1 + $0x88] sm:$0xff]  ;;  %v235_v23 = vld [vmem:[%s1416_s2 + $0x38] sm:$0xff]  ;;  %v234_v24 = vld [vmem:[%s1416_s2 + $0x30] sm:$0xff] }
  0x14   : > { %1020 = vmatmul.mubr.msk.f32.vlgmr.msra.gmra.mxu0 %vm372_vm0, %v203_v7  ;;  %1038 = vmatmul.mubr.msk.f32.vlgmr.msra.gmra.mxu1 %vm372_vm0, %v215_v8  ;;  %v209_v25 = vld [vmem:[%s1415_s1 + $0x38] sm:$0xff]  ;;  %v210_v27 = vld [vmem:[%s1415_s1 + $0x40] sm:$0xff]  ;;  %v237_v29 = vld [vmem:[%s1416_s2 + $0x48] sm:$0xff] }
  0x15   : > { %1022 = vmatprep.mubr.msk.f32.mxu0 %vm372_vm0, %v204_v9  ;;  %1040 = vmatprep.mubr.msk.f32.mxu1 %vm372_vm0, %v216_v10  ;;  %v221_v26 = vld [vmem:[%s1415_s1 + $0x98] sm:$0xff]  ;;  %v222_v28 = vld [vmem:[%s1415_s1 + $0xa0] sm:$0xff]  ;;  %v211_v31 = vld [vmem:[%s1415_s1 + $0x48] sm:$0xff] }
  0x16   : > { %269 = vperm.xlu1 %1086, %v231_v11   ;;  %259 = vperm.xlu0 %1085, %v229_v12   ;;  %v236_v30 = vld [vmem:[%s1416_s2 + $0x40] sm:$0xff]  ;;  %v223_v32 = vld [vmem:[%s1415_s1 + $0xa8] sm:$0xff]  ;;  %v212_v33 = vld [vmem:[%s1415_s1 + $0x50] sm:$0xff] }
  0x17   : > { %v224_v34 = vld [vmem:[%s1415_s1 + $0xb0] sm:$0xff]  ;;  %v239_v35 = vld [vmem:[%s1416_s2 + $0x58] sm:$0xff]  ;;  %v241_v39 = vld [vmem:[%s1416_s2 + $0x68] sm:$0xff] }
  0x18   : > { %1023 = vmatmul.mubr.msk.f32.gmra.mxu0 %vm372_vm0, %v205_v13  ;;  %1041 = vmatmul.mubr.msk.f32.gmra.mxu1 %vm372_vm0, %v217_v14  ;;  %v238_v36 = vld [vmem:[%s1416_s2 + $0x50] sm:$0xff]  ;;  %v213_v37 = vld [vmem:[%s1415_s1 + $0x58] sm:$0xff]  ;;  %v240_v40 = vld [vmem:[%s1416_s2 + $0x60] sm:$0xff] }
  0x19   : > { %1025 = vmatprep.mubr.msk.f32.mxu0 %vm372_vm0, %v206_v15  ;;  %1043 = vmatprep.mubr.msk.f32.mxu1 %vm372_vm0, %v218_v16  ;;  %v225_v38 = vld [vmem:[%s1415_s1 + $0xb8] sm:$0xff]  ;;  %v242_v42 = vld [vmem:[%s1416_s2 + $0x70] sm:$0xff]  ;;  %v245_v43 = vld [vmem:[%s1416_s2 + $0x88] sm:$0xff] }
  0x1a   : > { %279 = vperm.xlu1 %1086, %v233_v17   ;;  %274 = vperm.xlu0 %1085, %v232_v18   ;;  %v243_v41 = vld [vmem:[%s1416_s2 + $0x78] sm:$0xff]  ;;  %v244_v44 = vld [vmem:[%s1416_s2 + $0x80] sm:$0xff]  ;;  %v246_v46 = vld [vmem:[%s1416_s2 + $0x90] sm:$0xff] }
  0x1b   : > { %v247_v45 = vld [vmem:[%s1416_s2 + $0x98] sm:$0xff]  ;;  %v249_v47 = vld [vmem:[%s1416_s2 + $0xa8] sm:$0xff]  ;;  %v248_v48 = vld [vmem:[%s1416_s2 + $0xa0] sm:$0xff] }
  0x1c   : > { %1026 = vmatmul.mubr.msk.f32.gmra.mxu0 %vm372_vm0, %v207_v19  ;;  %1044 = vmatmul.mubr.msk.f32.gmra.mxu1 %vm372_vm0, %v219_v20  ;;  %v251_v49 = vld [vmem:[%s1416_s2 + $0xb8] sm:$0xff]  ;;  %v250_v50 = vld [vmem:[%s1416_s2 + $0xb0] sm:$0xff] }
  0x1d   : > { %1028 = vmatprep.mubr.msk.f32.mxu0 %vm372_vm0, %v208_v21  ;;  %1046 = vmatprep.mubr.msk.f32.mxu1 %vm372_vm0, %v220_v22 }
  0x1e   : > { %289 = vperm.xlu1 %1086, %v235_v23   ;;  %284 = vperm.xlu0 %1085, %v234_v24  }
  0x20   : > { %1029 = vmatmul.mubr.msk.f32.gmra.mxu0 %vm372_vm0, %v209_v25  ;;  %1047 = vmatmul.mubr.msk.f32.gmra.mxu1 %vm372_vm0, %v221_v26 }
  0x21   : > { %1031 = vmatprep.mubr.msk.f32.mxu0 %vm372_vm0, %v210_v27  ;;  %1049 = vmatprep.mubr.msk.f32.mxu1 %vm372_vm0, %v222_v28 }
  0x22   : > { %299 = vperm.xlu1 %1086, %v237_v29   ;;  %294 = vperm.xlu0 %1085, %v236_v30  }
  0x24   : > { %1032 = vmatmul.mubr.msk.f32.gmra.mxu0 %vm372_vm0, %v211_v31  ;;  %1050 = vmatmul.mubr.msk.f32.gmra.mxu1 %vm372_vm0, %v223_v32 }
  0x25   : > { %1034 = vmatprep.mubr.msk.f32.mxu0 %vm372_vm0, %v212_v33  ;;  %1052 = vmatprep.mubr.msk.f32.mxu1 %vm372_vm0, %v224_v34 }
  0x26   : > { %309 = vperm.xlu1 %1086, %v239_v35   ;;  %304 = vperm.xlu0 %1085, %v238_v36  }
  0x28   : > { %1035 = vmatmul.mubr.msk.f32.gmra.mxu0 %vm372_vm0, %v213_v37  ;;  %1053 = vmatmul.mubr.msk.f32.gmra.mxu1 %vm372_vm0, %v225_v38 }
  0x2a   : > { %319 = vperm.xlu1 %1086, %v241_v39   ;;  %314 = vperm.xlu0 %1085, %v240_v40  }
  0x2e   : > { %329 = vperm.xlu1 %1086, %v243_v41   ;;  %324 = vperm.xlu0 %1085, %v242_v42  }
  0x32   : > { %339 = vperm.xlu1 %1086, %v245_v43   ;;  %334 = vperm.xlu0 %1085, %v244_v44  }
  0x36   : > { %349 = vperm.xlu1 %1086, %v247_v45   ;;  %344 = vperm.xlu0 %1085, %v246_v46  }
  0x3a   : > { %359 = vperm.xlu1 %1086, %v249_v47   ;;  %354 = vperm.xlu0 %1085, %v248_v48  }
  0x3e   : > { %369 = vperm.xlu1 %1086, %v251_v49   ;;  %364 = vperm.xlu0 %1085, %v250_v50  }
  0x8a   : > { %v265_v51 = vpop.permute.xlu1 %264  ;;  %v255_v52 = vpop.permute.xlu0 %254 }
  0x91   : > { %v270_v53 = vpop.permute.xlu1 %269  ;;  %v260_v54 = vpop.permute.xlu0 %259 }
  0x95   : > { %v1324_v55 = vpop.permute.xlu1 %279  ;;  %v1326_v56 = vpop.permute.xlu0 %274 }
  0x99   : > { %v1328_v57 = vpop.permute.xlu1 %289  ;;  %v1330_v58 = vpop.permute.xlu0 %284 }
  0x9d   : > { %v1332_v59 = vpop.permute.xlu1 %299  ;;  %v1334_v60 = vpop.permute.xlu0 %294 }
  0xa1   : > { %v1336_v61 = vpop.permute.xlu1 %309  ;;  %v1338_v62 = vpop.permute.xlu0 %304 }
  0xa5   : > { %v320_v63 = vpop.permute.xlu1 %319  ;;  %v315_v0 = vpop.permute.xlu0 %314 }
  0xa9   : > { %v330_v1 = vpop.permute.xlu1 %329  ;;  %v325_v4 = vpop.permute.xlu0 %324 }
  0xad   : > { %v340_v15 = vpop.permute.xlu1 %339  ;;  %v335_v25 = vpop.permute.xlu0 %334 }
  0xb1   : > { %v350_v42 = vpop.permute.xlu1 %349 }
  0xd4   : > { %v1021_v2 = vpop.f32.mrf.mxu0  ;;  %v1039_v3 = vpop.f32.mrf.mxu1 }
  0xd5   : > { %v517_v5 = vadd.f32 %v1021_v2, %v260_v54  ;;  %v577_v6 = vadd.f32 %v1039_v3, %v320_v63 }
  0xd6   : > { %v511_v7 = vpop.f32.mrf.mxu0  ;;  %v571_v8 = vpop.f32.mrf.mxu1 }
  0xd7   : > { %vm631_vm1 = vcmp.ge.f32.partialorder %v517_v5, 0.0  ;;  %v655_v9 = vmul.f32 0.01, %v517_v5  ;;  %vm643_vm2 = vcmp.ge.f32.partialorder %v577_v6, 0.0  ;;  %v667_v10 = vmul.f32 0.01, %v577_v6 }
  0xd8   : > { %v512_v11 = vadd.f32 %v511_v7, %v255_v52  ;;  %v572_v12 = vadd.f32 %v571_v8, %v315_v0  ;;  %v1024_v13 = vpop.f32.mrf.mxu0  ;;  %v1042_v14 = vpop.f32.mrf.mxu1 }
  0xd9   : > { %v679_v16 = vsel %vm631_vm1, %v517_v5, %v655_v9  ;;  %v691_v17 = vsel %vm643_vm2, %v577_v6, %v667_v10  ;;  %v527_v18 = vadd.f32 %v1024_v13, %v270_v53  ;;  %v587_v19 = vadd.f32 %v1042_v14, %v330_v1  ;;  %v345_v52 = vpop.permute.xlu0 %344 }
  0xda   : > { %v966_v20 = vpack.c.bf16 %v679_v16, %v679_v16  ;;  %v978_v21 = vpack.c.bf16 %v691_v17, %v691_v17  ;;  %vm630_vm4 = vcmp.ge.f32.partialorder %v512_v11, 0.0  ;;  %v654_v22 = vmul.f32 0.01, %v512_v11  ;;  %v521_v23 = vpop.f32.mrf.mxu0  ;;  %v581_v24 = vpop.f32.mrf.mxu1 }
  0xdb   : > { %vm642_vm5 = vcmp.ge.f32.partialorder %v572_v12, 0.0  ;;  %v666_v26 = vmul.f32 0.01, %v572_v12  ;;  %vm633_vm6 = vcmp.ge.f32.partialorder %v527_v18, 0.0  ;;  %v657_v27 = vmul.f32 0.01, %v527_v18 }
  0xdc   : > { %800 = vst.msk [vmem:[%s1344_s27 + $0x4] sm:$0xf] %vm798_vm3, %v966_v20  ;;  %812 = vst.msk [vmem:[%s1344_s27 + $0x34] sm:$0xf] %vm798_vm3, %v978_v21  ;;  %v678_v28 = vsel %vm630_vm4, %v512_v11, %v654_v22  ;;  %vm645_vm7 = vcmp.ge.f32.partialorder %v587_v19, 0.0  ;;  %v522_v30 = vadd.f32 %v521_v23, %v265_v51  ;;  %v1027_v31 = vpop.f32.mrf.mxu0  ;;  %v1045_v32 = vpop.f32.mrf.mxu1  ;;  %v582_v36 = vadd.f32 %v581_v24, %v325_v4 }
  0xdd   : > { %v669_v29 = vmul.f32 0.01, %v587_v19  ;;  %v965_v33 = vpack.c.bf16 %v678_v28, %v678_v28  ;;  %v690_v34 = vsel %vm642_vm5, %v572_v12, %v666_v26  ;;  %v681_v35 = vsel %vm633_vm6, %v527_v18, %v657_v27  ;;  %v360_v18 = vpop.permute.xlu1 %359  ;;  %v355_v23 = vpop.permute.xlu0 %354 }
  0xde   : > { %v977_v37 = vpack.c.bf16 %v690_v34, %v690_v34  ;;  %v968_v38 = vpack.c.bf16 %v681_v35, %v681_v35  ;;  %vm632_vm8 = vcmp.ge.f32.partialorder %v522_v30, 0.0  ;;  %v531_v40 = vpop.f32.mrf.mxu0  ;;  %v591_v41 = vpop.f32.mrf.mxu1  ;;  %v656_v44 = vmul.f32 0.01, %v522_v30 }
  0xdf   : > { %v693_v39 = vsel %vm645_vm7, %v587_v19, %v669_v29  ;;  %799 = vst.msk [vmem:[%s1344_s27] sm:$0xf] %vm798_vm3, %v965_v33  ;;  %vm644_vm9 = vcmp.ge.f32.partialorder %v582_v36, 0.0  ;;  %v668_v45 = vmul.f32 0.01, %v582_v36  ;;  %v537_v46 = vadd.f32 %v1027_v31, %v1324_v55 }
  0xe0   : > { %v980_v43 = vpack.c.bf16 %v693_v39, %v693_v39  ;;  %811 = vst.msk [vmem:[%s1344_s27 + $0x30] sm:$0xf] %vm798_vm3, %v977_v37  ;;  %802 = vst.msk [vmem:[%s1344_s27 + $0xc] sm:$0xf] %vm798_vm3, %v968_v38  ;;  %v597_v47 = vadd.f32 %v1045_v32, %v340_v15  ;;  %v532_v48 = vadd.f32 %v531_v40, %v1326_v56  ;;  %v1030_v50 = vpop.f32.mrf.mxu0  ;;  %v1048_v51 = vpop.f32.mrf.mxu1 }
  0xe1   : > { %v592_v49 = vadd.f32 %v591_v41, %v335_v25  ;;  %v680_v53 = vsel %vm632_vm8, %v522_v30, %v656_v44  ;;  %v692_v54 = vsel %vm644_vm9, %v582_v36, %v668_v45  ;;  %v547_v63 = vadd.f32 %v1030_v50, %v1328_v57  ;;  %v370_v44 = vpop.permute.xlu1 %369 }
  0xe2   : > { %814 = vst.msk [vmem:[%s1344_s27 + $0x3c] sm:$0xf] %vm798_vm3, %v980_v43  ;;  %v607_v0 = vadd.f32 %v1048_v51, %v350_v42  ;;  %v967_v1 = vpack.c.bf16 %v680_v53, %v680_v53  ;;  %v979_v2 = vpack.c.bf16 %v692_v54, %v692_v54  ;;  %vm635_vm10 = vcmp.ge.f32.partialorder %v537_v46, 0.0  ;;  %v541_v3 = vpop.f32.mrf.mxu0  ;;  %v601_v56 = vpop.f32.mrf.mxu1 }
  0xe3   : > { %v659_v55 = vmul.f32 0.01, %v537_v46  ;;  %vm647_vm11 = vcmp.ge.f32.partialorder %v597_v47, 0.0  ;;  %v671_v4 = vmul.f32 0.01, %v597_v47  ;;  %vm634_vm12 = vcmp.ge.f32.partialorder %v532_v48, 0.0 }
  0xe4   : > { %v658_v5 = vmul.f32 0.01, %v532_v48  ;;  %801 = vst.msk [vmem:[%s1344_s27 + $0x8] sm:$0xf] %vm798_vm3, %v967_v1  ;;  %813 = vst.msk [vmem:[%s1344_s27 + $0x38] sm:$0xf] %vm798_vm3, %v979_v2  ;;  %v1033_v57 = vpop.f32.mrf.mxu0  ;;  %v1051_v8 = vpop.f32.mrf.mxu1  ;;  %v542_v22 = vadd.f32 %v541_v3, %v1330_v58  ;;  %v602_v25 = vadd.f32 %v601_v56, %v345_v52 }
  0xe5   : > { %v683_v6 = vsel %vm635_vm10, %v537_v46, %v659_v55  ;;  %vm646_vm13 = vcmp.ge.f32.partialorder %v592_v49, 0.0  ;;  %v670_v7 = vmul.f32 0.01, %v592_v49  ;;  %vm637_vm14 = vcmp.ge.f32.partialorder %v547_v63, 0.0 }
  0xe6   : > { %v970_v9 = vpack.c.bf16 %v683_v6, %v683_v6  ;;  %v695_v10 = vsel %vm647_vm11, %v597_v47, %v671_v4  ;;  %v682_v11 = vsel %vm634_vm12, %v532_v48, %v658_v5  ;;  %v661_v12 = vmul.f32 0.01, %v547_v63  ;;  %v551_v16 = vpop.f32.mrf.mxu0  ;;  %v611_v17 = vpop.f32.mrf.mxu1 }
  0xe7   : > { %v982_v13 = vpack.c.bf16 %v695_v10, %v695_v10  ;;  %v969_v14 = vpack.c.bf16 %v682_v11, %v682_v11  ;;  %v694_v15 = vsel %vm646_vm13, %v592_v49, %v670_v7  ;;  %vm649_vm15 = vcmp.ge.f32.partialorder %v607_v0, 0.0  ;;  %v365_v49 = vpop.permute.xlu0 %364 }
  0xe8   : > { %804 = vst.msk [vmem:[%s1344_s27 + $0x14] sm:$0xf] %vm798_vm3, %v970_v9  ;;  %v981_v19 = vpack.c.bf16 %v694_v15, %v694_v15  ;;  %v685_v20 = vsel %vm637_vm14, %v547_v63, %v661_v12  ;;  %v673_v21 = vmul.f32 0.01, %v607_v0  ;;  %v557_v26 = vadd.f32 %v1033_v57, %v1332_v59  ;;  %v1036_v58 = vpop.f32.mrf.mxu0  ;;  %v1054_v31 = vpop.f32.mrf.mxu1 }
  0xe9   : > { %816 = vst.msk [vmem:[%s1344_s27 + $0x44] sm:$0xf] %vm798_vm3, %v982_v13  ;;  %803 = vst.msk [vmem:[%s1344_s27 + $0x10] sm:$0xf] %vm798_vm3, %v969_v14  ;;  %v972_v24 = vpack.c.bf16 %v685_v20, %v685_v20  ;;  %v617_v27 = vadd.f32 %v1051_v8, %v360_v18  ;;  %vm636_vm0 = vcmp.ge.f32.partialorder %v542_v22, 0.0  ;;  %v552_v30 = vadd.f32 %v551_v16, %v1334_v60 }
  0xea   : > { %815 = vst.msk [vmem:[%s1344_s27 + $0x40] sm:$0xf] %vm798_vm3, %v981_v19  ;;  %v697_v28 = vsel %vm649_vm15, %v607_v0, %v673_v21  ;;  %v660_v29 = vmul.f32 0.01, %v542_v22  ;;  %vm648_vm1 = vcmp.ge.f32.partialorder %v602_v25, 0.0  ;;  %vm639_vm2 = vcmp.ge.f32.partialorder %v557_v26, 0.0  ;;  %v561_v42 = vpop.f32.mrf.mxu0  ;;  %v621_v43 = vpop.f32.mrf.mxu1 }
  0xeb   : > { %806 = vst.msk [vmem:[%s1344_s27 + $0x1c] sm:$0xf] %vm798_vm3, %v972_v24  ;;  %v984_v32 = vpack.c.bf16 %v697_v28, %v697_v28  ;;  %v672_v33 = vmul.f32 0.01, %v602_v25  ;;  %v663_v59 = vmul.f32 0.01, %v557_v26  ;;  %v612_v41 = vadd.f32 %v611_v17, %v355_v23 }
  0xec   : > { %v684_v34 = vsel %vm636_vm0, %v542_v22, %v660_v29  ;;  %vm651_vm4 = vcmp.ge.f32.partialorder %v617_v27, 0.0  ;;  %v675_v35 = vmul.f32 0.01, %v617_v27  ;;  %vm638_vm5 = vcmp.ge.f32.partialorder %v552_v30, 0.0 }
  0xed   : > { %818 = vst.msk [vmem:[%s1344_s27 + $0x4c] sm:$0xf] %vm798_vm3, %v984_v32  ;;  %v971_v36 = vpack.c.bf16 %v684_v34, %v684_v34  ;;  %v696_v37 = vsel %vm648_vm1, %v602_v25, %v672_v33  ;;  %v662_v60 = vmul.f32 0.01, %v552_v30  ;;  %v687_v39 = vsel %vm639_vm2, %v557_v26, %v663_v59 }
  0xee   : > { %v983_v38 = vpack.c.bf16 %v696_v37, %v696_v37  ;;  %v699_v40 = vsel %vm651_vm4, %v617_v27, %v675_v35  ;;  %v974_v45 = vpack.c.bf16 %v687_v39, %v687_v39  ;;  %v567_v48 = vadd.f32 %v1036_v58, %v1336_v61 }
  0xef   : > { %805 = vst.msk [vmem:[%s1344_s27 + $0x18] sm:$0xf] %vm798_vm3, %v971_v36  ;;  %v986_v46 = vpack.c.bf16 %v699_v40, %v699_v40  ;;  %v686_v47 = vsel %vm638_vm5, %v552_v30, %v662_v60  ;;  %vm650_vm6 = vcmp.ge.f32.partialorder %v612_v41, 0.0  ;;  %v674_v51 = vmul.f32 0.01, %v612_v41 }
  0xf0   : > { %817 = vst.msk [vmem:[%s1344_s27 + $0x48] sm:$0xf] %vm798_vm3, %v983_v38  ;;  %v973_v50 = vpack.c.bf16 %v686_v47, %v686_v47  ;;  %v627_v52 = vadd.f32 %v1054_v31, %v370_v44  ;;  %808 = vst.msk [vmem:[%s1344_s27 + $0x24] sm:$0xf] %vm798_vm3, %v974_v45  ;;  %vm641_vm7 = vcmp.ge.f32.partialorder %v567_v48, 0.0  ;;  %v562_v54 = vadd.f32 %v561_v42, %v1338_v62 }
  0xf1   : > { %820 = vst.msk [vmem:[%s1344_s27 + $0x54] sm:$0xf] %vm798_vm3, %v986_v46  ;;  %v665_v53 = vmul.f32 0.01, %v567_v48  ;;  %v622_v63 = vadd.f32 %v621_v43, %v365_v49  ;;  %v698_v61 = vsel %vm650_vm6, %v612_v41, %v674_v51 }
  0xf2   : > { %807 = vst.msk [vmem:[%s1344_s27 + $0x20] sm:$0xf] %vm798_vm3, %v973_v50  ;;  %vm653_vm8 = vcmp.ge.f32.partialorder %v627_v52, 0.0  ;;  %v677_v0 = vmul.f32 0.01, %v627_v52  ;;  %v985_v1 = vpack.c.bf16 %v698_v61, %v698_v61  ;;  %vm640_vm9 = vcmp.ge.f32.partialorder %v562_v54, 0.0 }
  0xf3   : > { %v689_v2 = vsel %vm641_vm7, %v567_v48, %v665_v53  ;;  %v664_v55 = vmul.f32 0.01, %v562_v54  ;;  %vm652_vm10 = vcmp.ge.f32.partialorder %v622_v63, 0.0  ;;  %v676_v4 = vmul.f32 0.01, %v622_v63 }
  0xf4   : > { %v976_v3 = vpack.c.bf16 %v689_v2, %v689_v2  ;;  %v701_v56 = vsel %vm653_vm8, %v627_v52, %v677_v0  ;;  %819 = vst.msk [vmem:[%s1344_s27 + $0x50] sm:$0xf] %vm798_vm3, %v985_v1 }
  0xf5   : > { %v988_v62 = vpack.c.bf16 %v701_v56, %v701_v56  ;;  %v688_v5 = vsel %vm640_vm9, %v562_v54, %v664_v55  ;;  %v700_v7 = vsel %vm652_vm10, %v622_v63, %v676_v4 }
  0xf6   : > { %810 = vst.msk [vmem:[%s1344_s27 + $0x2c] sm:$0xf] %vm798_vm3, %v976_v3  ;;  %v975_v6 = vpack.c.bf16 %v688_v5, %v688_v5  ;;  %v987_v57 = vpack.c.bf16 %v700_v7, %v700_v7 }
  0xf7   : > { %822 = vst.msk [vmem:[%s1344_s27 + $0x5c] sm:$0xf] %vm798_vm3, %v988_v62 }
  0xf8   : > { %809 = vst.msk [vmem:[%s1344_s27 + $0x28] sm:$0xf] %vm798_vm3, %v975_v6  ;;  %821 = vst.msk [vmem:[%s1344_s27 + $0x58] sm:$0xf] %vm798_vm3, %v987_v57 }
  0xf9 PF: > { %s13_s14 = sadd.s32 1, %s1109_s14   ;;  %s1418_s12 = smov %s1105_s13 }
  0xfa   : > { %p10_p5 = scmp.ge.s32.totalorder %s13_s14, 4   ;;  %s1419_s13 = smov %s1421_s15 }
  0xfc   :  { %12 = sbr.rel (!%p10_p5) target bundleno = 2 (0x2), region = 62 }

</bundles_post_ra>
